<compile_context>
chip_gen: v5e
topology: v5e:2x2
jax: 0.10.0
libtpu: 0.0.40
codegen_flags: <defaults>
</compile_context>

<pallas_src>
import functools

import jax
import jax.numpy as jnp
from jax.experimental import pallas as pl
from jax.experimental.pallas import tpu as pltpu


def _gcn2_kernel(x_ref, a0t_ref, a1t_ref, wk_ref, b_ref, o_ref, *, nb, c, l):
    """Processes `nb` batch elements per grid step.

    Block layouts (all plain 2D matmuls, no in-kernel relayouts):
      x_ref   : (nb, V, C*L)       node-major, x[b, v, c*L + l]
      a0t_ref : (nb, V, V)         dynamic adjacency, pre-transposed (A0^T)
      a1t_ref : (V, V)             static adjacency,  pre-transposed (A1^T)
      wk_ref  : (5*C*L, c_out*L)   kron(W.T, I_L): 1x1 conv in node-major layout
      b_ref   : (1, c_out*L)       bias repeated over L (column index o*L + l)
      o_ref   : (nb, V, c_out*L)   out[b, v, o*L + l]
    """
    cl = c * l
    a1t = a1t_ref[...]
    wk = wk_ref[...]
    bias = b_ref[...]

    def mm(lhs, rhs):
        return jnp.dot(lhs, rhs, preferred_element_type=jnp.float32)

    for b in range(nb):  # static unroll; nb is small
        xb = x_ref[b]          # (V, C*L)
        a0t = a0t_ref[b]       # (V, V)

        # Graph diffusion: one matmul per hop over the full (C*L) lane block.
        d1 = mm(a0t, xb)       # dynconv(x, A0)
        d2 = mm(a0t, d1)       # dynconv(dynconv(x, A0), A0)
        s1 = mm(a1t, xb)       # nconv(x, A1)
        s2 = mm(a1t, s1)       # nconv(nconv(x, A1), A1)

        # 1x1 conv over the concatenated channels, torch.cat order
        # [x, d1, d2, s1, s2], done as 5 block-matmuls against row-slices of
        # the L-expanded weight (slices are tile-aligned: multiples of 8 rows).
        acc = mm(xb, wk[0 * cl:1 * cl, :])
        acc = acc + mm(d1, wk[1 * cl:2 * cl, :])
        acc = acc + mm(d2, wk[2 * cl:3 * cl, :])
        acc = acc + mm(s1, wk[3 * cl:4 * cl, :])
        acc = acc + mm(s2, wk[4 * cl:5 * cl, :])

        # TODO(synk): F.dropout(training=True) is stochastic; implemented as
        # eval-mode identity here.
        o_ref[b] = (acc + bias).astype(o_ref.dtype)


def gcn_2_forward(x, a_dyn, a_static, w, b, *, batch_block=8):
    N, C, V, L = x.shape
    c_out = w.shape[0]
    assert w.shape == (c_out, 5 * C)

    # Batch elements per grid step (must divide N for clean blocks).
    nb = min(batch_block, N)
    while N % nb:
        nb -= 1

    # Layout plumbing in the wrapper (parameter/IO transforms only, no compute):
    #   x       -> node-major (N, V, C*L) so each hop is one (V,V)@(V,C*L) matmul
    #   A0, A1  -> pre-transposed so hops are plain row-major matmuls
    #   W       -> kron(W.T, I_L) so the 1x1 conv stays in node-major layout
    #   bias    -> repeated over L to match the (o*L + l) output columns
    x_w = x.transpose(0, 2, 1, 3).reshape(N, V, C * L)
    a_dyn_t = a_dyn.transpose(0, 2, 1)
    a_static_t = a_static.T
    w_k = jnp.kron(w.T, jnp.eye(L, dtype=w.dtype))          # (5*C*L, c_out*L)
    b_row = jnp.repeat(b, L).reshape(1, c_out * L)

    kernel = functools.partial(_gcn2_kernel, nb=nb, c=C, l=L)

    out_w = pl.pallas_call(
        kernel,
        out_shape=jax.ShapeDtypeStruct((N, V, c_out * L), x.dtype),
        grid_spec=pltpu.PrefetchScalarGridSpec(
            num_scalar_prefetch=0,
            grid=(N // nb,),
            in_specs=[
                pl.BlockSpec((nb, V, C * L), lambda n: (n, 0, 0)),       # x (node-major)
                pl.BlockSpec((nb, V, V), lambda n: (n, 0, 0)),           # dynamic adj^T
                pl.BlockSpec((V, V), lambda n: (0, 0)),                  # static adj^T (DMA'd once)
                pl.BlockSpec((5 * C * L, c_out * L), lambda n: (0, 0)),  # expanded weight (once)
                pl.BlockSpec((1, c_out * L), lambda n: (0, 0)),          # bias row (once)
            ],
            # Lane-dense output: last dim c_out*L is a multiple of 128.
            out_specs=pl.BlockSpec((nb, V, c_out * L), lambda n: (n, 0, 0)),
        ),
        compiler_params=pltpu.CompilerParams(
            dimension_semantics=("parallel",)),   # batch blocks are independent
    )(x_w, a_dyn_t, a_static_t, w_k, b_row)

    # out_w[b, v, o*L + l] -> (N, c_out, V, L)
    return out_w.reshape(N, V, c_out, L).transpose(0, 2, 1, 3)


def gcn_2_reference(x, a_dyn, a_static, w, b):
    """Pure-JAX reference mirroring the PyTorch forward."""
    d1 = jnp.einsum('ncvl,nvw->ncwl', x, a_dyn)
    d2 = jnp.einsum('ncvl,nvw->ncwl', d1, a_dyn)
    s1 = jnp.einsum('ncvl,vw->ncwl', x, a_static)
    s2 = jnp.einsum('ncvl,vw->ncwl', s1, a_static)
    h = jnp.concatenate([x, d1, d2, s1, s2], axis=1)
    out = jnp.einsum('oi,nivl->novl', w, h) + b[None, :, None, None]
    return out


if __name__ == "__main__":
    # Small shapes implied by the module: batch N, channels C, nodes V, time L.
    N, C, V, L, c_out = 2, 4, 16, 8, 32

    key = jax.random.PRNGKey(0)
    kx, ka0, ka1, kw, kb = jax.random.split(key, 5)
    x = jax.random.normal(kx, (N, C, V, L), dtype=jnp.float32)
    # Row-stochastic adjacencies (deterministic, synthetic).
    a_dyn = jax.nn.softmax(
        jax.random.normal(ka0, (N, V, V), dtype=jnp.float32), axis=-1)
    a_static = jax.nn.softmax(
        jax.random.normal(ka1, (V, V), dtype=jnp.float32), axis=-1)
    # linear(c_in=5*C, c_out): Conv2d 1x1 weight (c_out, 5C, 1, 1) -> (c_out, 5C).
    w = 0.1 * jax.random.normal(kw, (c_out, 5 * C), dtype=jnp.float32)
    b = 0.1 * jax.random.normal(kb, (c_out,), dtype=jnp.float32)

    out = gcn_2_forward(x, a_dyn, a_static, w, b)
    out = jax.block_until_ready(out)

    ref = gcn_2_reference(x, a_dyn, a_static, w, b)
    assert out.shape == (N, c_out, V, L)
    max_err = float(jnp.max(jnp.abs(out - ref)))
    assert jnp.allclose(out, ref, atol=1e-4, rtol=1e-4), max_err

    print("KERNEL_OK")
</pallas_src>

<mosaic_0001>
module attributes {stable_mosaic.version = 11 : i64} {
  func.func @_gcn2_kernel(%arg0: i32, %arg1: memref<2x16x32xf32, #tpu.memory_space<vmem>>, %arg2: memref<2x16x16xf32, #tpu.memory_space<vmem>>, %arg3: memref<16x16xf32, #tpu.memory_space<vmem>>, %arg4: memref<160x256xf32, #tpu.memory_space<vmem>>, %arg5: memref<1x256xf32, #tpu.memory_space<vmem>>, %arg6: memref<2x16x256xf32, #tpu.memory_space<vmem>>) attributes {dimension_semantics = [#tpu.dimension_semantics<parallel>], iteration_bounds = array<i64: 1>, scalar_prefetch = 0 : i64, scratch_operands = 0 : i64, tpu.core_type = #tpu.core_type<tc>, window_params = [{transform_indices = @transform_0, window_bounds = array<i64: 2, 16, 32>}, {transform_indices = @transform_1, window_bounds = array<i64: 2, 16, 16>}, {pipeline_mode = #tpu.pipeline_mode<synchronous>, transform_indices = @transform_2, window_bounds = array<i64: 16, 16>}, {pipeline_mode = #tpu.pipeline_mode<synchronous>, transform_indices = @transform_3, window_bounds = array<i64: 160, 256>}, {pipeline_mode = #tpu.pipeline_mode<synchronous>, transform_indices = @transform_4, window_bounds = array<i64: 1, 256>}, {transform_indices = @transform_5, window_bounds = array<i64: 2, 16, 256>}]} {
    %c0 = arith.constant 0 : index
    %c0_0 = arith.constant 0 : index
    %0 = vector.load %arg3[%c0, %c0_0] : memref<16x16xf32, #tpu.memory_space<vmem>>, vector<16x16xf32>
    %c0_1 = arith.constant 0 : index
    %c0_2 = arith.constant 0 : index
    %1 = vector.load %arg4[%c0_1, %c0_2] : memref<160x256xf32, #tpu.memory_space<vmem>>, vector<160x256xf32>
    %c0_3 = arith.constant 0 : index
    %c0_4 = arith.constant 0 : index
    %2 = vector.load %arg5[%c0_3, %c0_4] : memref<1x256xf32, #tpu.memory_space<vmem>>, vector<1x256xf32>
    %c0_5 = arith.constant 0 : index
    %c0_6 = arith.constant 0 : index
    %c0_7 = arith.constant 0 : index
    %3 = vector.load %arg1[%c0_5, %c0_6, %c0_7] : memref<2x16x32xf32, #tpu.memory_space<vmem>>, vector<1x16x32xf32>
    %4 = vector.shape_cast %3 : vector<1x16x32xf32> to vector<16x32xf32>
    %c0_8 = arith.constant 0 : index
    %c0_9 = arith.constant 0 : index
    %c0_10 = arith.constant 0 : index
    %5 = vector.load %arg2[%c0_8, %c0_9, %c0_10] : memref<2x16x16xf32, #tpu.memory_space<vmem>>, vector<1x16x16xf32>
    %6 = vector.shape_cast %5 : vector<1x16x16xf32> to vector<16x16xf32>
    %cst = arith.constant dense<0.000000e+00> : vector<16x32xf32>
    %7 = tpu.matmul %6, %4, %cst {dimension_numbers = #tpu.dot_dimension_numbers<[1], [0], [0], [1], [0, 0, 1, 1], [], []>} : vector<16x16xf32>, vector<16x32xf32>, vector<16x32xf32> -> vector<16x32xf32>
    %cst_11 = arith.constant dense<0.000000e+00> : vector<16x32xf32>
    %8 = tpu.matmul %6, %7, %cst_11 {dimension_numbers = #tpu.dot_dimension_numbers<[1], [0], [0], [1], [0, 0, 1, 1], [], []>} : vector<16x16xf32>, vector<16x32xf32>, vector<16x32xf32> -> vector<16x32xf32>
    %cst_12 = arith.constant dense<0.000000e+00> : vector<16x32xf32>
    %9 = tpu.matmul %0, %4, %cst_12 {dimension_numbers = #tpu.dot_dimension_numbers<[1], [0], [0], [1], [0, 0, 1, 1], [], []>} : vector<16x16xf32>, vector<16x32xf32>, vector<16x32xf32> -> vector<16x32xf32>
    %cst_13 = arith.constant dense<0.000000e+00> : vector<16x32xf32>
    %10 = tpu.matmul %0, %9, %cst_13 {dimension_numbers = #tpu.dot_dimension_numbers<[1], [0], [0], [1], [0, 0, 1, 1], [], []>} : vector<16x16xf32>, vector<16x32xf32>, vector<16x32xf32> -> vector<16x32xf32>
    %11 = vector.extract_strided_slice %1 {offsets = [0, 0], sizes = [32, 256], strides = [1, 1]} : vector<160x256xf32> to vector<32x256xf32>
    %cst_14 = arith.constant dense<0.000000e+00> : vector<16x256xf32>
    %12 = tpu.matmul %4, %11, %cst_14 {dimension_numbers = #tpu.dot_dimension_numbers<[1], [0], [0], [1], [0, 0, 1, 1], [], []>} : vector<16x32xf32>, vector<32x256xf32>, vector<16x256xf32> -> vector<16x256xf32>
    %13 = vector.extract_strided_slice %1 {offsets = [32, 0], sizes = [32, 256], strides = [1, 1]} : vector<160x256xf32> to vector<32x256xf32>
    %cst_15 = arith.constant dense<0.000000e+00> : vector<16x256xf32>
    %14 = tpu.matmul %7, %13, %cst_15 {dimension_numbers = #tpu.dot_dimension_numbers<[1], [0], [0], [1], [0, 0, 1, 1], [], []>} : vector<16x32xf32>, vector<32x256xf32>, vector<16x256xf32> -> vector<16x256xf32>
    %15 = arith.addf %12, %14 : vector<16x256xf32>
    %16 = vector.extract_strided_slice %1 {offsets = [64, 0], sizes = [32, 256], strides = [1, 1]} : vector<160x256xf32> to vector<32x256xf32>
    %cst_16 = arith.constant dense<0.000000e+00> : vector<16x256xf32>
    %17 = tpu.matmul %8, %16, %cst_16 {dimension_numbers = #tpu.dot_dimension_numbers<[1], [0], [0], [1], [0, 0, 1, 1], [], []>} : vector<16x32xf32>, vector<32x256xf32>, vector<16x256xf32> -> vector<16x256xf32>
    %18 = arith.addf %15, %17 : vector<16x256xf32>
    %19 = vector.extract_strided_slice %1 {offsets = [96, 0], sizes = [32, 256], strides = [1, 1]} : vector<160x256xf32> to vector<32x256xf32>
    %cst_17 = arith.constant dense<0.000000e+00> : vector<16x256xf32>
    %20 = tpu.matmul %9, %19, %cst_17 {dimension_numbers = #tpu.dot_dimension_numbers<[1], [0], [0], [1], [0, 0, 1, 1], [], []>} : vector<16x32xf32>, vector<32x256xf32>, vector<16x256xf32> -> vector<16x256xf32>
    %21 = arith.addf %18, %20 : vector<16x256xf32>
    %22 = vector.extract_strided_slice %1 {offsets = [128, 0], sizes = [32, 256], strides = [1, 1]} : vector<160x256xf32> to vector<32x256xf32>
    %cst_18 = arith.constant dense<0.000000e+00> : vector<16x256xf32>
    %23 = tpu.matmul %10, %22, %cst_18 {dimension_numbers = #tpu.dot_dimension_numbers<[1], [0], [0], [1], [0, 0, 1, 1], [], []>} : vector<16x32xf32>, vector<32x256xf32>, vector<16x256xf32> -> vector<16x256xf32>
    %24 = arith.addf %21, %23 : vector<16x256xf32>
    %25 = vector.broadcast %2 : vector<1x256xf32> to vector<16x256xf32>
    %26 = arith.addf %24, %25 : vector<16x256xf32>
    %c0_19 = arith.constant 0 : index
    %c0_20 = arith.constant 0 : index
    %c0_21 = arith.constant 0 : index
    %27 = vector.load %arg6[%c0_19, %c0_20, %c0_21] : memref<2x16x256xf32, #tpu.memory_space<vmem>>, vector<1x16x256xf32>
    %28 = vector.shape_cast %27 : vector<1x16x256xf32> to vector<16x256xf32>
    %29 = vector.shape_cast %26 : vector<16x256xf32> to vector<1x16x256xf32>
    tpu.vector_store %arg6[%c0_19, %c0_20, %c0_21], %29 {strides = array<i32>} : memref<2x16x256xf32, #tpu.memory_space<vmem>>, vector<1x16x256xf32>,
    %c1 = arith.constant 1 : index
    %c0_22 = arith.constant 0 : index
    %c0_23 = arith.constant 0 : index
    %30 = vector.load %arg1[%c1, %c0_22, %c0_23] : memref<2x16x32xf32, #tpu.memory_space<vmem>>, vector<1x16x32xf32>
    %31 = vector.shape_cast %30 : vector<1x16x32xf32> to vector<16x32xf32>
    %c1_24 = arith.constant 1 : index
    %c0_25 = arith.constant 0 : index
    %c0_26 = arith.constant 0 : index
    %32 = vector.load %arg2[%c1_24, %c0_25, %c0_26] : memref<2x16x16xf32, #tpu.memory_space<vmem>>, vector<1x16x16xf32>
    %33 = vector.shape_cast %32 : vector<1x16x16xf32> to vector<16x16xf32>
    %cst_27 = arith.constant dense<0.000000e+00> : vector<16x32xf32>
    %34 = tpu.matmul %33, %31, %cst_27 {dimension_numbers = #tpu.dot_dimension_numbers<[1], [0], [0], [1], [0, 0, 1, 1], [], []>} : vector<16x16xf32>, vector<16x32xf32>, vector<16x32xf32> -> vector<16x32xf32>
    %cst_28 = arith.constant dense<0.000000e+00> : vector<16x32xf32>
    %35 = tpu.matmul %33, %34, %cst_28 {dimension_numbers = #tpu.dot_dimension_numbers<[1], [0], [0], [1], [0, 0, 1, 1], [], []>} : vector<16x16xf32>, vector<16x32xf32>, vector<16x32xf32> -> vector<16x32xf32>
    %cst_29 = arith.constant dense<0.000000e+00> : vector<16x32xf32>
    %36 = tpu.matmul %0, %31, %cst_29 {dimension_numbers = #tpu.dot_dimension_numbers<[1], [0], [0], [1], [0, 0, 1, 1], [], []>} : vector<16x16xf32>, vector<16x32xf32>, vector<16x32xf32> -> vector<16x32xf32>
    %cst_30 = arith.constant dense<0.000000e+00> : vector<16x32xf32>
    %37 = tpu.matmul %0, %36, %cst_30 {dimension_numbers = #tpu.dot_dimension_numbers<[1], [0], [0], [1], [0, 0, 1, 1], [], []>} : vector<16x16xf32>, vector<16x32xf32>, vector<16x32xf32> -> vector<16x32xf32>
    %38 = vector.extract_strided_slice %1 {offsets = [0, 0], sizes = [32, 256], strides = [1, 1]} : vector<160x256xf32> to vector<32x256xf32>
    %cst_31 = arith.constant dense<0.000000e+00> : vector<16x256xf32>
    %39 = tpu.matmul %31, %38, %cst_31 {dimension_numbers = #tpu.dot_dimension_numbers<[1], [0], [0], [1], [0, 0, 1, 1], [], []>} : vector<16x32xf32>, vector<32x256xf32>, vector<16x256xf32> -> vector<16x256xf32>
    %40 = vector.extract_strided_slice %1 {offsets = [32, 0], sizes = [32, 256], strides = [1, 1]} : vector<160x256xf32> to vector<32x256xf32>
    %cst_32 = arith.constant dense<0.000000e+00> : vector<16x256xf32>
    %41 = tpu.matmul %34, %40, %cst_32 {dimension_numbers = #tpu.dot_dimension_numbers<[1], [0], [0], [1], [0, 0, 1, 1], [], []>} : vector<16x32xf32>, vector<32x256xf32>, vector<16x256xf32> -> vector<16x256xf32>
    %42 = arith.addf %39, %41 : vector<16x256xf32>
    %43 = vector.extract_strided_slice %1 {offsets = [64, 0], sizes = [32, 256], strides = [1, 1]} : vector<160x256xf32> to vector<32x256xf32>
    %cst_33 = arith.constant dense<0.000000e+00> : vector<16x256xf32>
    %44 = tpu.matmul %35, %43, %cst_33 {dimension_numbers = #tpu.dot_dimension_numbers<[1], [0], [0], [1], [0, 0, 1, 1], [], []>} : vector<16x32xf32>, vector<32x256xf32>, vector<16x256xf32> -> vector<16x256xf32>
    %45 = arith.addf %42, %44 : vector<16x256xf32>
    %46 = vector.extract_strided_slice %1 {offsets = [96, 0], sizes = [32, 256], strides = [1, 1]} : vector<160x256xf32> to vector<32x256xf32>
    %cst_34 = arith.constant dense<0.000000e+00> : vector<16x256xf32>
    %47 = tpu.matmul %36, %46, %cst_34 {dimension_numbers = #tpu.dot_dimension_numbers<[1], [0], [0], [1], [0, 0, 1, 1], [], []>} : vector<16x32xf32>, vector<32x256xf32>, vector<16x256xf32> -> vector<16x256xf32>
    %48 = arith.addf %45, %47 : vector<16x256xf32>
    %49 = vector.extract_strided_slice %1 {offsets = [128, 0], sizes = [32, 256], strides = [1, 1]} : vector<160x256xf32> to vector<32x256xf32>
    %cst_35 = arith.constant dense<0.000000e+00> : vector<16x256xf32>
    %50 = tpu.matmul %37, %49, %cst_35 {dimension_numbers = #tpu.dot_dimension_numbers<[1], [0], [0], [1], [0, 0, 1, 1], [], []>} : vector<16x32xf32>, vector<32x256xf32>, vector<16x256xf32> -> vector<16x256xf32>
    %51 = arith.addf %48, %50 : vector<16x256xf32>
    %52 = vector.broadcast %2 : vector<1x256xf32> to vector<16x256xf32>
    %53 = arith.addf %51, %52 : vector<16x256xf32>
    %c1_36 = arith.constant 1 : index
    %c0_37 = arith.constant 0 : index
    %c0_38 = arith.constant 0 : index
    %54 = vector.load %arg6[%c1_36, %c0_37, %c0_38] : memref<2x16x256xf32, #tpu.memory_space<vmem>>, vector<1x16x256xf32>
    %55 = vector.shape_cast %54 : vector<1x16x256xf32> to vector<16x256xf32>
    %56 = vector.shape_cast %53 : vector<16x256xf32> to vector<1x16x256xf32>
    tpu.vector_store %arg6[%c1_36, %c0_37, %c0_38], %56 {strides = array<i32>} : memref<2x16x256xf32, #tpu.memory_space<vmem>>, vector<1x16x256xf32>,
    return
  }
  func.func @transform_0(%arg0: i32) -> (i32, i32, i32) {
    %c0_i32 = arith.constant 0 : i32
    %c0_i32_0 = arith.constant 0 : i32
    %c0_i32_1 = arith.constant 0 : i32
    return %arg0, %c0_i32, %c0_i32_0 : i32, i32, i32
  }
  func.func @transform_1(%arg0: i32) -> (i32, i32, i32) {
    %c0_i32 = arith.constant 0 : i32
    %c0_i32_0 = arith.constant 0 : i32
    %c0_i32_1 = arith.constant 0 : i32
    return %arg0, %c0_i32, %c0_i32_0 : i32, i32, i32
  }
  func.func @transform_2(%arg0: i32) -> (i32, i32) {
    %c0_i32 = arith.constant 0 : i32
    %c0_i32_0 = arith.constant 0 : i32
    %c0_i32_1 = arith.constant 0 : i32
    return %c0_i32, %c0_i32_0 : i32, i32
  }
  func.func @transform_3(%arg0: i32) -> (i32, i32) {
    %c0_i32 = arith.constant 0 : i32
    %c0_i32_0 = arith.constant 0 : i32
    %c0_i32_1 = arith.constant 0 : i32
    return %c0_i32, %c0_i32_0 : i32, i32
  }
  func.func @transform_4(%arg0: i32) -> (i32, i32) {
    %c0_i32 = arith.constant 0 : i32
    %c0_i32_0 = arith.constant 0 : i32
    %c0_i32_1 = arith.constant 0 : i32
    return %c0_i32, %c0_i32_0 : i32, i32
  }
  func.func @transform_5(%arg0: i32) -> (i32, i32, i32) {
    %c0_i32 = arith.constant 0 : i32
    %c0_i32_0 = arith.constant 0 : i32
    %c0_i32_1 = arith.constant 0 : i32
    return %arg0, %c0_i32, %c0_i32_0 : i32, i32, i32
  }
}

</mosaic_0001>

<bundles_post_ra>
// kernel: tpu_custom_call.1
= control target key start
LH: loop header
LB: loop body
LE: loop exit
PB: predicated region body
PF: predicated region fallthrough
CT: control target
= control target key end

     0   :  { %10 = vsyncpa [#allocation3], 0  ;;  %s1408_s0 = inlined_call_operand.hbm [shape: f32[2,16,32], index: 0, kind: input, shape index: {}]   ;;  %s1409_s1 = inlined_call_operand.hbm [shape: f32[2,16,16], index: 1, kind: input, shape index: {}]   ;;  %s1410_s2 = inlined_call_operand.hbm [shape: f32[16,16], index: 2, kind: input, shape index: {}]   ;;  %s1411_s3 = inlined_call_operand.hbm [shape: f32[160,256], index: 3, kind: input, shape index: {}]   ;;  %s1412_s4 = inlined_call_operand.vmem [shape: f32[1,256], index: 4, kind: input, shape index: {}]   ;;  %s1413_s5 = inlined_call_operand.hbm [shape: f32[2,16,256], index: 5, kind: output, shape index: {}]  }
   0x1   :  { %11 = vsyncpa [#allocation6], 0 }
   0x2   :  { %12 = vsyncpa [#allocation9], 0 }
   0x3   :  { %13 = vsyncpa [#allocation4], 0  ;;  %s31_s20 = sshll.u32 %s1409_s1, 4  ;;  %s1121_s21 = smov [#allocation5]   ;;  %s32_s20 = int_to_ptr.hbm [resolvable:$true] %s31_s20 }
   0x4   :  { %s33_s22 = sshll.u32 %s1121_s21, 4  ;;  %s18_s25 = sshll.u32 %s1408_s0, 4  ;;  %s34_s22 = int_to_ptr.vmem [resolvable:$true] %s33_s22  ;;  %s19_s25 = int_to_ptr.hbm [resolvable:$true] %s18_s25 }
   0x5   :  { %s1122_s26 = smov 128   ;;  %s1123_s27 = smov 8  }
   0x6   :  { %39 = dma.hbm_to_vmem [thread:$0]  %s32_s20, 512, %s34_s22, [#allocation6], %s1122_s26, %s1122_s26, %s1123_s27  }
   0x7   :  { %s1124_s28 = smov [#allocation2]   ;;  %s44_s7 = sshll.u32 %s1410_s2, 4  ;;  %s45_s7 = int_to_ptr.hbm [resolvable:$true] %s44_s7 }
   0x8   :  { %s20_s29 = sshll.u32 %s1124_s28, 4  ;;  %s57_s9 = sshll.u32 %s1411_s3, 4  ;;  %s21_s29 = int_to_ptr.vmem [resolvable:$true] %s20_s29  ;;  %s58_s9 = int_to_ptr.hbm [resolvable:$true] %s57_s9 }
   0x9   :  { %26 = dma.hbm_to_vmem [thread:$0]  %s19_s25, 512, %s21_s29, [#allocation3], %s1122_s26, %s1122_s26, %s1123_s27  }
   0xa   :  { %s1125_s10 = smov [#allocation7]   ;;  %s1126_s0 = smov [#allocation8]  }
   0xb   :  { %s46_s11 = sshll.u32 %s1125_s10, 4  ;;  %s59_s12 = sshll.u32 %s1126_s0, 4  ;;  %s47_s11 = int_to_ptr.vmem [resolvable:$true] %s46_s11  ;;  %s60_s12 = int_to_ptr.vmem [resolvable:$true] %s59_s12 }
   0xc   :  { %52 = dma.hbm_to_vmem [thread:$0]  %s45_s7, 256, %s47_s11, [#allocation6], %s1122_s26, %s1122_s26, %s1123_s27  }
   0xd   :  { %s1127_s13 = smov 256   ;;  %s1128_s14 = smov 16  }
   0xe   :  { %65 = dma.hbm_to_vmem [thread:$0]  %s58_s9, 5120, %s60_s12, [#allocation9], %s1127_s13, %s1127_s13, %s1128_s14  }
   0xf   :  { %1113 = dma.done.wait [#allocation3], 512  }
  0x10   :  { %1114 = vsyncadd [#allocation3], 4294966784 }
  0x11   :  { %1115 = dma.done.wait [#allocation6], 768  }
  0x12   :  { %1116 = vsyncadd [#allocation6], 4294966528 }
  0x13   :  { %1117 = dma.done.wait [#allocation9], 5120  }
  0x14   :  { %1118 = vsyncadd [#allocation9], 4294962176  ;;  %v1175_v0 = vld [vmem:[#allocation2 + $0x8] sm:$0xff]  ;;  %v1177_v1 = vld [vmem:[#allocation2] sm:$0xff]  ;;  %vm131_vm0 = vcmask 130048   ;;  %vm236_vm1 = vcmask 261120  }
  0x15   :  { %152 = vmatpush.msra.mxu0 %v1175_v0  ;;  %204 = vmatpush.msra.mxu2 %v1175_v0  ;;  %v129_v2 = vld [vmem:[#allocation5] sm:$0xff]  ;;  %v1190_v6 = vld [vmem:[#allocation8 + $0x20] sm:$0xff]  ;;  %v130_v11 = vld [vmem:[#allocation5 + $0x8] sm:$0xff]  ;;  %s913_s18 = sshll.u32 %s1413_s5, 4  ;;  %s914_s18 = int_to_ptr.hbm [resolvable:$true] %s913_s18 }
  0x16   :  { %v1181_v3 = vld [vmem:[#allocation7] sm:$0xff]  ;;  %v98_v7 = vld [vmem:[#allocation8 + $0x60] sm:$0xff]  ;;  %v1198_v12 = vld [vmem:[#allocation7 + $0x8] sm:$0xff] }
  0x17   :  { %v1183_v4 = vld [vmem:[#allocation8 + $0x30] sm:$0xff]  ;;  %153 = vmatpush.msra.mxu0 %v1177_v1  ;;  %205 = vmatpush.msra.mxu2 %v1177_v1  ;;  %v1196_v10 = vld [vmem:[#allocation8] sm:$0xff]  ;;  %v1221_v18 = vld [vmem:[#allocation2 + $0x18] sm:$0xff] }
  0x18   :  { %v100_v5 = vld [vmem:[#allocation8 + $0x70] sm:$0xff]  ;;  %928 = vmatmul.msk.f32.vlgmr.msra.gmra.mxu0 %vm131_vm0, %v129_v2  ;;  %932 = vmatmul.msk.f32.vlgmr.msra.gmra.mxu2 %vm131_vm0, %v1181_v3  ;;  %v94_v13 = vld [vmem:[#allocation8 + $0x40] sm:$0xff]  ;;  %v1230_v23 = vld [vmem:[#allocation8 + $0x78] sm:$0xff] }
  0x19   :  { %307 = vmatpush.msrb.mxu2 %v1183_v4  ;;  %255 = vmatpush.msrb.mxu0 %v100_v5  ;;  %v1193_v8 = vld [vmem:[#allocation8 + $0x10] sm:$0xff]  ;;  %v1212_v15 = vld [vmem:[#allocation8 + $0xe0] sm:$0xff]  ;;  %v1234_v24 = vld [vmem:[#allocation8 + $0x68] sm:$0xff] }
  0x1a   :  { %v96_v9 = vld [vmem:[#allocation8 + $0x50] sm:$0xff]  ;;  %v1218_v17 = vld [vmem:[#allocation8 + $0xc0] sm:$0xff]  ;;  %v1237_v26 = vld [vmem:[#allocation8 + $0x58] sm:$0xff] }
  0x1b   :  { %308 = vmatpush.msrb.mxu2 %v1190_v6  ;;  %256 = vmatpush.msrb.mxu0 %v98_v7  ;;  %v1209_v14 = vld [vmem:[#allocation8 + $0xf0] sm:$0xff]  ;;  %v1224_v19 = vld [vmem:[#allocation2 + $0x10] sm:$0xff]  ;;  %v1240_v27 = vld [vmem:[#allocation8 + $0x38] sm:$0xff] }
  0x1c   :  { %v1214_v16 = vld [vmem:[#allocation8 + $0xd0] sm:$0xff]  ;;  %v1245_v28 = vld [vmem:[#allocation8 + $0x48] sm:$0xff]  ;;  %v1251_v30 = vld [vmem:[#allocation5 + $0x10] sm:$0xff] }
  0x1d   :  { %309 = vmatpush.msrb.mxu2 %v1193_v8  ;;  %257 = vmatpush.msrb.mxu0 %v96_v9  ;;  %v1247_v29 = vld [vmem:[#allocation8 + $0x28] sm:$0xff]  ;;  %v1253_v31 = vld [vmem:[#allocation8 + $0x18] sm:$0xff]  ;;  %v108_v38 = vld [vmem:[#allocation8 + $0xb0] sm:$0xff] }
  0x1e   :  { %v1257_v32 = vld [vmem:[#allocation8 + $0x8] sm:$0xff]  ;;  %v1262_v33 = vld [vmem:[#allocation8 + $0xf8] sm:$0xff]  ;;  %v106_v40 = vld [vmem:[#allocation8 + $0xa0] sm:$0xff] }
  0x1f   :  { %310 = vmatpush.msrb.mxu2 %v1196_v10  ;;  %258 = vmatpush.msrb.mxu0 %v94_v13  ;;  %v1267_v34 = vld [vmem:[#allocation8 + $0xe8] sm:$0xff]  ;;  %v1273_v36 = vld [vmem:[#allocation8 + $0xd8] sm:$0xff]  ;;  %v104_v42 = vld [vmem:[#allocation8 + $0x90] sm:$0xff] }
  0x20   :  { %929 = vmatmul.msk.f32.gmra.mxu0 %vm131_vm0, %v130_v11  ;;  %933 = vmatmul.msk.f32.gmra.mxu2 %vm131_vm0, %v1198_v12  ;;  %v1271_v35 = vld [vmem:[#allocation5 + $0x18] sm:$0xff]  ;;  %v1289_v39 = vld [vmem:[#allocation8 + $0xb8] sm:$0xff]  ;;  %v102_v44 = vld [vmem:[#allocation8 + $0x80] sm:$0xff] }
  0x21   :  { %415 = vmatpush.msra.mxu2 %v1209_v14  ;;  %v1276_v37 = vld [vmem:[#allocation8 + $0xc8] sm:$0xff]  ;;  %359 = vmatpush.msra.mxu0 %v108_v38  ;;  %v1295_v43 = vld [vmem:[#allocation8 + $0x98] sm:$0xff]  ;;  %v124_v46 = vld [vmem:[#allocation8 + $0x130] sm:$0xff] }
  0x22   :  { %v1292_v41 = vld [vmem:[#allocation8 + $0xa8] sm:$0xff]  ;;  %v1301_v47 = vld [vmem:[#allocation8 + $0x138] sm:$0xff]  ;;  %v122_v48 = vld [vmem:[#allocation8 + $0x120] sm:$0xff] }
  0x23   :  { %416 = vmatpush.msra.mxu2 %v1212_v15  ;;  %360 = vmatpush.msra.mxu0 %v106_v40  ;;  %v1298_v45 = vld [vmem:[#allocation8 + $0x88] sm:$0xff]  ;;  %v120_v50 = vld [vmem:[#allocation8 + $0x110] sm:$0xff]  ;;  %v121_v51 = vld [vmem:[#allocation8 + $0x118] sm:$0xff] }
  0x24   :  { %v123_v49 = vld [vmem:[#allocation8 + $0x128] sm:$0xff]  ;;  %v118_v53 = vld [vmem:[#allocation8 + $0x100] sm:$0xff] }
  0x25   :  { %417 = vmatpush.msra.mxu2 %v1214_v16  ;;  %361 = vmatpush.msra.mxu0 %v104_v42  ;;  %v119_v54 = vld [vmem:[#allocation8 + $0x108] sm:$0xff] }
  0x27   :  { %418 = vmatpush.msra.mxu2 %v1218_v17  ;;  %362 = vmatpush.msra.mxu0 %v102_v44 }
  0x28   :  { %940 = vmatmul.msk.f32.vlgmr.msrb.gmra.mxu2 %vm236_vm1, %v1177_v1 }
  0x29   :  { %548 = vmatpush.msrb.mxu2 %v1221_v18 }
  0x2b   :  { %549 = vmatpush.msrb.mxu2 %v1224_v19 }
  0x30   :  { %941 = vmatmul.msk.f32.gmra.mxu2 %vm236_vm1, %v1175_v0 }
  0x95   :  { %v155_v20 = vpop.f32.mrf.mxu0 }
  0x96   :  { %936 = vmatmul.msk.f32.vlgmr.msrb.gmra.mxu0 %vm236_vm1, %v155_v20 }
  0x97   :  { %471 = vmatpush.msrb.mxu0 %v124_v46 }
  0x99   :  { %472 = vmatpush.msrb.mxu0 %v122_v48 }
  0x9b   :  { %v207_v21 = vpop.f32.mrf.mxu2  ;;  %473 = vmatpush.msrb.mxu0 %v120_v50 }
  0x9c   :  { %948 = vmatmul.msk.f32.vlgmr.msra.gmra.mxu2 %vm236_vm1, %v207_v21 }
  0x9d   :  { %v158_v22 = vpop.f32.mrf.mxu0  ;;  %644 = vmatpush.msra.mxu2 %v100_v5  ;;  %474 = vmatpush.msrb.mxu0 %v118_v53 }
  0x9e   :  { %175 = vmatpush.msra.mxu1 %v158_v22  ;;  %937 = vmatmul.msk.f32.gmra.mxu0 %vm236_vm1, %v158_v22 }
  0x9f   :  { %645 = vmatpush.msra.mxu2 %v98_v7 }
  0xa0   :  { %176 = vmatpush.msra.mxu1 %v155_v20 }
  0xa1   :  { %930 = vmatmul.msk.f32.vlgmr.msra.gmra.mxu1 %vm131_vm0, %v129_v2  ;;  %646 = vmatpush.msra.mxu2 %v96_v9 }
  0xa2   :  { %278 = vmatpush.msrb.mxu1 %v1230_v23 }
  0xa3   :  { %v210_v25 = vpop.f32.mrf.mxu2  ;;  %647 = vmatpush.msra.mxu2 %v94_v13 }
  0xa4   :  { %227 = vmatpush.msra.mxu3 %v210_v25  ;;  %949 = vmatmul.msk.f32.gmra.mxu2 %vm236_vm1, %v210_v25 }
  0xa5   :  { %279 = vmatpush.msrb.mxu1 %v1234_v24 }
  0xa6   :  { %228 = vmatpush.msra.mxu3 %v207_v21 }
  0xa7   :  { %934 = vmatmul.msk.f32.vlgmr.msra.gmra.mxu3 %vm131_vm0, %v1181_v3  ;;  %280 = vmatpush.msrb.mxu1 %v1237_v26 }
  0xa8   :  { %330 = vmatpush.msrb.mxu3 %v1240_v27 }
  0xa9   :  { %931 = vmatmul.msk.f32.gmra.mxu1 %vm131_vm0, %v130_v11 }
  0xaa   :  { %281 = vmatpush.msrb.mxu1 %v1245_v28  ;;  %331 = vmatpush.msrb.mxu3 %v1247_v29 }
  0xab   :  { %v1304_v52 = vpop.f32.mrf.mxu2 }
  0xac   :  { %956 = vmatmul.msk.f32.vlgmr.msrb.gmra.mxu2 %vm131_vm0, %v1251_v30  ;;  %332 = vmatpush.msrb.mxu3 %v1253_v31 }
  0xad   :  { %382 = vmatpush.msra.mxu1 %v1289_v39  ;;  %748 = vmatpush.msrb.mxu2 %v108_v38 }
  0xae   :  { %333 = vmatpush.msrb.mxu3 %v1257_v32 }
  0xaf   :  { %935 = vmatmul.msk.f32.gmra.mxu3 %vm131_vm0, %v1198_v12  ;;  %383 = vmatpush.msra.mxu1 %v1292_v41 }
  0xb0   :  { %438 = vmatpush.msra.mxu3 %v1262_v33  ;;  %749 = vmatpush.msrb.mxu2 %v106_v40 }
  0xb1   :  { %938 = vmatmul.msk.f32.vlgmr.msrb.gmra.mxu1 %vm236_vm1, %v155_v20 }
  0xb2   :  { %439 = vmatpush.msra.mxu3 %v1267_v34  ;;  %384 = vmatpush.msra.mxu1 %v1295_v43 }
  0xb3   :  { %750 = vmatpush.msrb.mxu2 %v104_v42  ;;  %v1306_v55 = vpop.f32.mrf.mxu2 }
  0xb4   :  { %957 = vmatmul.msk.f32.gmra.mxu2 %vm131_vm0, %v1271_v35  ;;  %440 = vmatpush.msra.mxu3 %v1273_v36 }
  0xb5   :  { %385 = vmatpush.msra.mxu1 %v1298_v45  ;;  %751 = vmatpush.msrb.mxu2 %v102_v44 }
  0xb6   :  { %441 = vmatpush.msra.mxu3 %v1276_v37 }
  0xb7   :  { %942 = vmatmul.msk.f32.vlgmr.msrb.gmra.mxu3 %vm236_vm1, %v1177_v1  ;;  %494 = vmatpush.msrb.mxu1 %v1301_v47 }
  0xb9   :  { %939 = vmatmul.msk.f32.gmra.mxu1 %vm236_vm1, %v158_v22 }
  0xba   :  { %495 = vmatpush.msrb.mxu1 %v123_v49 }
  0xbc   :  { %496 = vmatpush.msrb.mxu1 %v121_v51 }
  0xbe   :  { %497 = vmatpush.msrb.mxu1 %v119_v54 }
  0xbf   :  { %943 = vmatmul.msk.f32.gmra.mxu3 %vm236_vm1, %v1175_v0 }
  0xc7   :  { %950 = vmatmul.msk.f32.vlgmr.msra.gmra.mxu3 %vm236_vm1, %v207_v21 }
  0xcf   :  { %951 = vmatmul.msk.f32.gmra.mxu3 %vm236_vm1, %v210_v25 }
 0x113   :  { %v260_v0 = vpop.f32.mrf.mxu0 }
 0x114   :  { %v313_v11 = vadd.f32 %v1304_v52, %v260_v0 }
 0x11b   :  { %v263_v2 = vpop.f32.mrf.mxu0 }
 0x11e   :  { %v178_v56 = vpop.f32.mrf.mxu1 }
 0x11f   :  { %944 = vmatmul.msk.f32.vlgmr.msra.gmra.mxu0 %vm236_vm1, %v178_v56  ;;  %946 = vmatmul.msk.f32.vlgmr.msra.gmra.mxu1 %vm236_vm1, %v178_v56  ;;  %v1310_v57 = vpop.f32.mrf.mxu2 }
 0x120   :  { %594 = vmatpush.msra.mxu0 %v1221_v18 }
 0x122   :  { %595 = vmatpush.msra.mxu0 %v1224_v19 }
 0x126   :  { %v181_v58 = vpop.f32.mrf.mxu1 }
 0x127   :  { %945 = vmatmul.msk.f32.gmra.mxu0 %vm236_vm1, %v181_v58  ;;  %947 = vmatmul.msk.f32.gmra.mxu1 %vm236_vm1, %v181_v58  ;;  %v1316_v59 = vpop.f32.mrf.mxu2 }
 0x12a   :  { %v230_v60 = vpop.f32.mrf.mxu3 }
 0x12e   :  { %v283_v1 = vpop.f32.mrf.mxu1 }
 0x12f   :  { %952 = vmatmul.msk.f32.vlgmr.msrb.gmra.mxu0 %vm236_vm1, %v230_v60  ;;  %954 = vmatmul.msk.f32.vlgmr.msrb.gmra.mxu1 %vm236_vm1, %v230_v60  ;;  %v551_v61 = vpop.f32.mrf.mxu2 }
 0x130   :  { %696 = vmatpush.msrb.mxu0 %v1183_v4  ;;  %964 = vmatmul.msk.f32.vlgmr.msra.gmra.mxu2 %vm236_vm1, %v551_v61 }
 0x131   :  { %860 = vmatpush.msra.mxu2 %v124_v46 }
 0x132   :  { %697 = vmatpush.msrb.mxu0 %v1190_v6  ;;  %v233_v62 = vpop.f32.mrf.mxu3 }
 0x133   :  { %861 = vmatpush.msra.mxu2 %v122_v48 }
 0x134   :  { %698 = vmatpush.msrb.mxu0 %v1193_v8 }
 0x135   :  { %862 = vmatpush.msra.mxu2 %v120_v50 }
 0x136   :  { %699 = vmatpush.msrb.mxu0 %v1196_v10  ;;  %v286_v4 = vpop.f32.mrf.mxu1 }
 0x137   :  { %953 = vmatmul.msk.f32.gmra.mxu0 %vm236_vm1, %v233_v62  ;;  %955 = vmatmul.msk.f32.gmra.mxu1 %vm236_vm1, %v233_v62  ;;  %v554_v63 = vpop.f32.mrf.mxu2 }
 0x138   :  { %571 = vmatpush.msrb.mxu3 %v554_v63  ;;  %965 = vmatmul.msk.f32.gmra.mxu2 %vm236_vm1, %v554_v63 }
 0x139   :  { %863 = vmatpush.msra.mxu2 %v118_v53 }
 0x13a   :  { %572 = vmatpush.msrb.mxu3 %v551_v61  ;;  %v335_v5 = vpop.f32.mrf.mxu3 }
 0x13b   :  { %958 = vmatmul.msk.f32.vlgmr.msrb.gmra.mxu3 %vm131_vm0, %v1251_v30  ;;  %v336_v13 = vadd.f32 %v335_v5, %v283_v1 }
 0x13c   :  { %667 = vmatpush.msra.mxu3 %v1230_v23 }
 0x13e   :  { %668 = vmatpush.msra.mxu3 %v1234_v24 }
 0x13f   :  { %960 = vmatmul.msk.f32.vlgmr.msra.gmra.mxu0 %vm131_vm0, %v1181_v3 }
 0x140   :  { %669 = vmatpush.msra.mxu3 %v1237_v26  ;;  %804 = vmatpush.msra.mxu0 %v1209_v14  ;;  %v316_v26 = vadd.f32 %v1306_v55, %v263_v2 }
 0x142   :  { %670 = vmatpush.msra.mxu3 %v1245_v28  ;;  %805 = vmatpush.msra.mxu0 %v1212_v15  ;;  %v338_v8 = vpop.f32.mrf.mxu3 }
 0x143   :  { %959 = vmatmul.msk.f32.gmra.mxu3 %vm131_vm0, %v1271_v35  ;;  %v339_v28 = vadd.f32 %v338_v8, %v286_v4 }
 0x144   :  { %806 = vmatpush.msra.mxu0 %v1214_v16  ;;  %771 = vmatpush.msrb.mxu3 %v1289_v39 }
 0x146   :  { %807 = vmatpush.msra.mxu0 %v1218_v17  ;;  %772 = vmatpush.msrb.mxu3 %v1292_v41  ;;  %v126_v17 = vld [vmem:[%s1412_s4] sm:$0x3]  ;;  %s1129_s4 = smov [#allocation10]  }
 0x147   :  { %961 = vmatmul.msk.f32.gmra.mxu0 %vm131_vm0, %v1198_v12  ;;  %v1360_v21 = vperm.slane %v126_v17, 0  ;;  %v1362_v23 = vperm.slane %v126_v17, 1  ;;  %s911_s15 = sshll.u32 %s1129_s4, 4  ;;  %s912_s15 = int_to_ptr.vmem [resolvable:$true] %s911_s15 }
 0x148   :  { %773 = vmatpush.msrb.mxu3 %v1295_v43 }
 0x14a   :  { %774 = vmatpush.msrb.mxu3 %v1298_v45  ;;  %v443_v16 = vpop.f32.mrf.mxu3 }
 0x14b   :  { %966 = vmatmul.msk.f32.vlgmr.msra.gmra.mxu3 %vm236_vm1, %v551_v61 }
 0x14c   :  { %883 = vmatpush.msra.mxu3 %v1301_v47 }
 0x14e   :  { %884 = vmatpush.msra.mxu3 %v123_v49 }
 0x14f   :  { %968 = vmatmul.msk.f32.vlgmr.msrb.gmra.mxu0 %vm236_vm1, %v1224_v19 }
 0x150   :  { %885 = vmatpush.msra.mxu3 %v121_v51 }
 0x152   :  { %886 = vmatpush.msra.mxu3 %v119_v54  ;;  %v446_v42 = vpop.f32.mrf.mxu3 }
 0x153   :  { %967 = vmatmul.msk.f32.gmra.mxu3 %vm236_vm1, %v554_v63 }
 0x157   :  { %969 = vmatmul.msk.f32.gmra.mxu0 %vm236_vm1, %v1221_v18 }
 0x19c   :  { %v364_v6 = vpop.f32.mrf.mxu0  ;;  %v387_v7 = vpop.f32.mrf.mxu1 }
 0x19d   :  { %v393_v14 = vadd.f32 %v364_v6, %v313_v11  ;;  %v394_v15 = vadd.f32 %v387_v7, %v336_v13 }
 0x19f   :  { %v449_v20 = vadd.f32 %v1310_v57, %v393_v14  ;;  %v450_v22 = vadd.f32 %v443_v16, %v394_v15 }
 0x1a4   :  { %v367_v9 = vpop.f32.mrf.mxu0  ;;  %v390_v10 = vpop.f32.mrf.mxu1 }
 0x1a5   :  { %v395_v38 = vadd.f32 %v367_v9, %v316_v26  ;;  %v396_v39 = vadd.f32 %v390_v10, %v339_v28 }
 0x1a7   :  { %v451_v43 = vadd.f32 %v1316_v59, %v395_v38  ;;  %v452_v44 = vadd.f32 %v446_v42, %v396_v39 }
 0x1ac   :  { %v476_v24 = vpop.f32.mrf.mxu0  ;;  %v499_v25 = vpop.f32.mrf.mxu1 }
 0x1ad   :  { %v505_v30 = vadd.f32 %v476_v24, %v449_v20  ;;  %v506_v35 = vadd.f32 %v499_v25, %v450_v22 }
 0x1af   :  { %v514_v40 = vadd.f32 %v1360_v21, %v505_v30  ;;  %v515_v41 = vadd.f32 %v1362_v23, %v506_v35 }
 0x1b1   :  { %518 = vst [vmem:[#allocation10] sm:$0xff] %v514_v40 }
 0x1b2   :  { %519 = vst [vmem:[#allocation10 + $0x8] sm:$0xff] %v515_v41 }
 0x1b4   :  { %v479_v45 = vpop.f32.mrf.mxu0  ;;  %v502_v46 = vpop.f32.mrf.mxu1 }
 0x1b5   :  { %v507_v47 = vadd.f32 %v479_v45, %v451_v43  ;;  %v508_v48 = vadd.f32 %v502_v46, %v452_v44 }
 0x1b7   :  { %v516_v49 = vadd.f32 %v1360_v21, %v507_v47  ;;  %v517_v50 = vadd.f32 %v1362_v23, %v508_v48 }
 0x1b9   :  { %520 = vst [vmem:[#allocation10 + $0x10] sm:$0xff] %v516_v49 }
 0x1ba   :  { %521 = vst [vmem:[#allocation10 + $0x18] sm:$0xff] %v517_v50 }
 0x1bc   :  { %v597_v51 = vpop.f32.mrf.mxu0 }
 0x1bd   :  { %976 = vmatmul.msk.f32.vlgmr.msra.gmra.mxu0 %vm236_vm1, %v597_v51 }
 0x1be   :  { %v574_v52 = vpop.f32.mrf.mxu3 }
 0x1bf   :  { %972 = vmatmul.msk.f32.vlgmr.msrb.gmra.mxu2 %vm236_vm1, %v574_v52  ;;  %974 = vmatmul.msk.f32.vlgmr.msrb.gmra.mxu3 %vm236_vm1, %v574_v52 }
 0x1c4   :  { %v600_v53 = vpop.f32.mrf.mxu0 }
 0x1c5   :  { %617 = vmatpush.msra.mxu1 %v600_v53  ;;  %977 = vmatmul.msk.f32.gmra.mxu0 %vm236_vm1, %v600_v53 }
 0x1c6   :  { %v577_v54 = vpop.f32.mrf.mxu3 }
 0x1c7   :  { %618 = vmatpush.msra.mxu1 %v597_v51  ;;  %973 = vmatmul.msk.f32.gmra.mxu2 %vm236_vm1, %v577_v54 }
 0x1c8   :  { %962 = vmatmul.msk.f32.vlgmr.msra.gmra.mxu1 %vm131_vm0, %v1181_v3  ;;  %975 = vmatmul.msk.f32.gmra.mxu3 %vm236_vm1, %v577_v54 }
 0x1c9   :  { %719 = vmatpush.msrb.mxu1 %v1240_v27  ;;  %v649_v27 = vpop.f32.mrf.mxu2 }
 0x1cb   :  { %720 = vmatpush.msrb.mxu1 %v1247_v29 }
 0x1cd   :  { %721 = vmatpush.msrb.mxu1 %v1253_v31 }
 0x1ce   :  { %v672_v29 = vpop.f32.mrf.mxu3 }
 0x1cf   :  { %722 = vmatpush.msrb.mxu1 %v1257_v32 }
 0x1d0   :  { %963 = vmatmul.msk.f32.gmra.mxu1 %vm131_vm0, %v1198_v12 }
 0x1d1   :  { %827 = vmatpush.msra.mxu1 %v1262_v33 }
 0x1d3   :  { %828 = vmatpush.msra.mxu1 %v1267_v34 }
 0x1d5   :  { %829 = vmatpush.msra.mxu1 %v1273_v36 }
 0x1d6   :  { %v675_v31 = vpop.f32.mrf.mxu3 }
 0x1d7   :  { %830 = vmatpush.msra.mxu1 %v1276_v37 }
 0x1d8   :  { %970 = vmatmul.msk.f32.vlgmr.msrb.gmra.mxu1 %vm236_vm1, %v1224_v19  ;;  %v652_v19 = vpop.f32.mrf.mxu2 }
 0x1e0   :  { %971 = vmatmul.msk.f32.gmra.mxu1 %vm236_vm1, %v1221_v18  ;;  %v701_v18 = vpop.f32.mrf.mxu0 }
 0x1e1   :  { %v702_v57 = vadd.f32 %v701_v18, %v649_v27 }
 0x1e8   :  { %978 = vmatmul.msk.f32.vlgmr.msra.gmra.mxu1 %vm236_vm1, %v597_v51  ;;  %v704_v37 = vpop.f32.mrf.mxu0 }
 0x1e9   :  { %v705_v4 = vadd.f32 %v704_v37, %v652_v19 }
 0x1f0   :  { %979 = vmatmul.msk.f32.gmra.mxu1 %vm236_vm1, %v600_v53 }
 0x23a   :  { %v809_v61 = vpop.f32.mrf.mxu0 }
 0x242   :  { %v753_v33 = vpop.f32.mrf.mxu2  ;;  %v776_v34 = vpop.f32.mrf.mxu3 }
 0x243   :  { %v782_v60 = vadd.f32 %v753_v33, %v702_v57  ;;  %v812_v14 = vpop.f32.mrf.mxu0 }
 0x245   :  { %v620_v3 = vpop.f32.mrf.mxu1  ;;  %v838_v0 = vadd.f32 %v809_v61, %v782_v60 }
 0x246   :  { %980 = vmatmul.msk.f32.vlgmr.msra.gmra.mxu2 %vm236_vm1, %v620_v3  ;;  %982 = vmatmul.msk.f32.vlgmr.msra.gmra.mxu3 %vm236_vm1, %v620_v3 }
 0x24a   :  { %v756_v55 = vpop.f32.mrf.mxu2 }
 0x24b   :  { %v779_v56 = vpop.f32.mrf.mxu3  ;;  %v784_v8 = vadd.f32 %v756_v55, %v705_v4 }
 0x24d   :  { %v623_v12 = vpop.f32.mrf.mxu1  ;;  %v840_v16 = vadd.f32 %v812_v14, %v784_v8 }
 0x24e   :  { %981 = vmatmul.msk.f32.gmra.mxu2 %vm236_vm1, %v623_v12  ;;  %983 = vmatmul.msk.f32.gmra.mxu3 %vm236_vm1, %v623_v12 }
 0x255   :  { %v724_v32 = vpop.f32.mrf.mxu1 }
 0x256   :  { %v725_v58 = vadd.f32 %v724_v32, %v672_v29 }
 0x258   :  { %v783_v62 = vadd.f32 %v776_v34, %v725_v58 }
 0x25d   :  { %v727_v36 = vpop.f32.mrf.mxu1 }
 0x25e   :  { %v728_v5 = vadd.f32 %v727_v36, %v675_v31 }
 0x260   :  { %v785_v13 = vadd.f32 %v779_v56, %v728_v5 }
 0x265   :  { %v832_v59 = vpop.f32.mrf.mxu1 }
 0x266   :  { %v839_v63 = vadd.f32 %v832_v59, %v783_v62 }
 0x26d   :  { %v835_v11 = vpop.f32.mrf.mxu1 }
 0x26e   :  { %v841_v15 = vadd.f32 %v835_v11, %v785_v13 }
 0x2c9   :  { %v865_v1 = vpop.f32.mrf.mxu2  ;;  %v888_v2 = vpop.f32.mrf.mxu3 }
 0x2ca   :  { %v894_v6 = vadd.f32 %v865_v1, %v838_v0  ;;  %v895_v7 = vadd.f32 %v888_v2, %v839_v63 }
 0x2cc   :  { %v898_v9 = vadd.f32 %v894_v6, %v1360_v21  ;;  %v899_v10 = vadd.f32 %v895_v7, %v1362_v23 }
 0x2ce   :  { %903 = vst [vmem:[#allocation10 + $0x20] sm:$0xff] %v898_v9 }
 0x2cf   :  { %904 = vst [vmem:[#allocation10 + $0x28] sm:$0xff] %v899_v10 }
 0x2d1   :  { %v868_v17 = vpop.f32.mrf.mxu2  ;;  %v891_v20 = vpop.f32.mrf.mxu3 }
 0x2d2   :  { %v896_v22 = vadd.f32 %v868_v17, %v840_v16  ;;  %v897_v24 = vadd.f32 %v891_v20, %v841_v15 }
 0x2d4   :  { %v900_v25 = vadd.f32 %v896_v22, %v1360_v21  ;;  %v901_v26 = vadd.f32 %v897_v24, %v1362_v23 }
 0x2d6   :  { %905 = vst [vmem:[#allocation10 + $0x30] sm:$0xff] %v900_v25 }
 0x2d7   :  { %906 = vst [vmem:[#allocation10 + $0x38] sm:$0xff] %v901_v26 }
 0x2d8   :  { %919 = dma.vmem_to_hbm [thread:$0]  %s912_s15, 1024, %s914_s18, [#allocation4], %s1127_s13, %s1127_s13, %s1128_s14  }
 0x2d9   :  { %1119 = dma.done.wait [#allocation4], 1024  }
 0x2da   :  { %1120 = vsyncadd [#allocation4], 4294966272 }
 0x2db   :  { %924 = vsyncpa [#allocation3], 1 }
 0x2dc   :  { %925 = vsyncpa [#allocation6], 1 }
 0x2dd   :  { %926 = vsyncpa [#allocation9], 1 }
 0x2de   :  { %927 = vsyncpa [#allocation4], 1 }

</bundles_post_ra>
